<compile_context>
chip_gen: v5e
topology: v5e:2x2
jax: 0.10.0
libtpu: 0.0.40
codegen_flags: <defaults>
</compile_context>

<pallas_src>
import jax
import jax.numpy as jnp
from jax.experimental import pallas as pl
from jax.experimental.pallas import tpu as pltpu


_TM_CAP = 512    # batch-tile cap (sublane axis, multiple of 8)
_TN_CAP = 1024   # output-feature tile cap (lane axis, multiple of 128)
_TK_CAP = 2048   # reduction-tile cap (multiple of 128)


def _round_up(x, m):
    return ((x + m - 1) // m) * m


def _fc_kernel(x_ref, w_ref, b_ref, o_ref):
    """One (tm, tn) output tile of y = x @ W_t + b, accumulated over the K grid axis.

    x_ref: (tm, tk)  activation tile (cast to the MXU input dtype below)
    w_ref: (tk, tn)  weight tile, already (K, N)-transposed and (typically) bf16
    b_ref: (1,  tn)  bias tile (f32)
    o_ref: (tm, tn)  f32 output tile; block index is constant over K -> VMEM-resident accumulator
    """
    k = pl.program_id(2)

    @pl.when(k == 0)
    def _():
        # Bias added exactly once, as the accumulator's initial value.
        o_ref[...] = jnp.broadcast_to(b_ref[...].astype(o_ref.dtype), o_ref.shape)

    o_ref[...] += jnp.dot(
        x_ref[...].astype(w_ref.dtype),   # bf16 MXU inputs; f32 accumulation below
        w_ref[...],
        preferred_element_type=jnp.float32,
    )


def prepare_fc_params(weight, bias, mxu_dtype=jnp.bfloat16):
    """One-time parameter prep (amortized across all forward calls).

    Transposes the PyTorch-layout (n_outputs, n_inputs) weight to (K, N) so the kernel issues a
    plain NN contraction (no per-tile transpose on the MXU feed path) and casts it to the MXU
    input dtype (bf16 by default; accumulation stays f32 in-kernel).  Pass mxu_dtype=jnp.float32
    to recover bit-accurate f32 behaviour at lower MXU throughput.
    """
    w_t = jnp.asarray(weight).T.astype(mxu_dtype)
    b2d = jnp.asarray(bias).astype(jnp.float32).reshape(1, -1)
    return w_t, b2d


@jax.jit
def fc_forward(x, w_t, bias2d):
    """y = x @ w_t + bias, with w_t of shape (n_inputs, n_outputs) from prepare_fc_params."""
    batch, k_dim = x.shape
    k_dim_w, n_out = w_t.shape
    assert k_dim_w == k_dim, (k_dim_w, k_dim)
    assert bias2d.shape == (1, n_out), bias2d.shape

    # --- tile selection ---------------------------------------------------------------------
    # M: cover the whole batch with one tile when it fits -> the weight streams from HBM once.
    tm = min(_TM_CAP, _round_up(batch, 8))
    # N: lane-dense multiples of 128 (unmasked vst on full tiles).
    tn = min(_TN_CAP, _round_up(n_out, 128))
    # K: a single step when it fits the cap (block == full dim, no padding); otherwise the largest
    # 128-multiple <= cap that divides the 128-padded K (keeps zero-padding <= 127 elements).
    if k_dim <= _TK_CAP:
        tk = k_dim
        k_pad = k_dim
    else:
        k_pad = _round_up(k_dim, 128)
        tk = _TK_CAP
        while k_pad % tk != 0:
            tk -= 128

    m_steps = pl.cdiv(batch, tm)
    n_steps = pl.cdiv(n_out, tn)
    k_steps = k_pad // tk

    # Give v7x's second TensorCore work if the problem collapsed to one parallel tile.
    if m_steps * n_steps == 1 and tm >= 256:
        tm = _round_up(tm // 2, 8)
        m_steps = pl.cdiv(batch, tm)

    # --- K-only zero padding (M/N edge blocks are handled by Pallas' masked writes) ----------
    x_p = x if k_pad == k_dim else jnp.pad(x, ((0, 0), (0, k_pad - k_dim)))
    w_p = w_t if k_pad == k_dim else jnp.pad(w_t, ((0, k_pad - k_dim), (0, 0)))

    # --- VMEM budget: double-buffered tiles + headroom, capped for v7x (64 MiB physical) -----
    x_tile_b = tm * tk * x_p.dtype.itemsize
    w_tile_b = tk * tn * w_p.dtype.itemsize
    o_tile_b = tm * tn * 4
    b_tile_b = tn * 4
    tile_bytes = 2 * (x_tile_b + w_tile_b + o_tile_b + b_tile_b)
    vmem_limit = int(min(48 * 1024 * 1024,
                         max(int(1.4 * tile_bytes) + (2 << 20), 16 * 1024 * 1024)))

    cost = pl.CostEstimate(
        flops=2 * batch * n_out * k_pad,
        transcendentals=0,
        # Streamed bytes including the K-panel re-read factors.
        bytes_accessed=int(batch * k_pad * x_p.dtype.itemsize * n_steps
                           + k_pad * n_out * w_p.dtype.itemsize * m_steps
                           + batch * n_out * 4
                           + n_out * 4 * m_steps),
    )

    out = pl.pallas_call(
        _fc_kernel,
        out_shape=jax.ShapeDtypeStruct((batch, n_out), jnp.float32),
        grid_spec=pltpu.PrefetchScalarGridSpec(
            num_scalar_prefetch=0,
            grid=(m_steps, n_steps, k_steps),
            in_specs=[
                pl.BlockSpec((tm, tk), lambda i, j, k: (i, k)),   # x tile
                pl.BlockSpec((tk, tn), lambda i, j, k: (k, j)),   # (K, N) weight tile
                pl.BlockSpec((1, tn), lambda i, j, k: (0, j)),    # bias tile
            ],
            out_specs=pl.BlockSpec((tm, tn), lambda i, j, k: (i, j)),
        ),
        compiler_params=pltpu.CompilerParams(
            dimension_semantics=("parallel", "parallel", "arbitrary"),
            vmem_limit_bytes=vmem_limit,
        ),
        cost_estimate=cost,
    )(x_p, w_p, bias2d)

    return out


def _check(key, batch, n_inputs, n_outputs, tol=5e-2):
    kx, kw, kb = jax.random.split(key, 3)
    bound = 1.0 / (n_inputs ** 0.5)
    weight = jax.random.uniform(kw, (n_outputs, n_inputs), jnp.float32, -bound, bound)
    bias = jax.random.uniform(kb, (n_outputs,), jnp.float32, -bound, bound)
    x = jax.random.normal(kx, (batch, n_inputs), jnp.float32)

    w_t, b2d = prepare_fc_params(weight, bias)             # bf16 MXU inputs, one-time prep
    out = jax.block_until_ready(fc_forward(x, w_t, b2d))
    ref = x @ weight.T + bias                              # f32 reference

    assert out.shape == (batch, n_outputs), (out.shape, (batch, n_outputs))
    max_err = float(jnp.max(jnp.abs(out - ref)))
    assert jnp.allclose(out, ref, atol=tol, rtol=tol), max_err


if __name__ == "__main__":
    key = jax.random.PRNGKey(0)
    k1, k2, k3 = jax.random.split(key, 3)

    # 1) The module's default tiny shape (n_inputs=4, n_outputs=1): single padded-free tile.
    _check(k1, batch=8, n_inputs=4, n_outputs=1)

    # 2) Partial M and N edge blocks with zero padding copies; single K step; M split in two.
    _check(k2, batch=250, n_inputs=640, n_outputs=300)

    # 3) Multi-step K accumulation (K > 2048 -> 2 K steps) plus a masked N edge block.
    _check(k3, batch=128, n_inputs=2304, n_outputs=192)

    print("KERNEL_OK")
</pallas_src>

<mosaic_0001>
module attributes {stable_mosaic.version = 11 : i64} {
  func.func @_fc_kernel(%arg0: i32, %arg1: i32, %arg2: i32, %arg3: memref<8x4xf32, #tpu.memory_space<vmem>>, %arg4: memref<4x128xbf16, #tpu.memory_space<vmem>>, %arg5: memref<1x128xf32, #tpu.memory_space<vmem>>, %arg6: memref<8x128xf32, #tpu.memory_space<vmem>>) attributes {dimension_semantics = [#tpu.dimension_semantics<parallel>, #tpu.dimension_semantics<parallel>, #tpu.dimension_semantics<arbitrary>], iteration_bounds = array<i64: 1, 1, 1>, scalar_prefetch = 0 : i64, scratch_operands = 0 : i64, tpu.core_type = #tpu.core_type<tc>, window_params = [{transform_indices = @transform_0, window_bounds = array<i64: 8, 4>}, {transform_indices = @transform_1, window_bounds = array<i64: 4, 128>}, {transform_indices = @transform_2, window_bounds = array<i64: 1, 128>}, {transform_indices = @transform_3, window_bounds = array<i64: 8, 128>}]} {
    %c0_i32 = arith.constant 0 : i32
    %0 = arith.cmpi eq, %arg2, %c0_i32 : i32
    %1 = arith.extui %0 : i1 to i32
    %c0_i32_0 = arith.constant 0 : i32
    %2 = arith.cmpi ne, %1, %c0_i32_0 : i32
    scf.if %2 {
      %c0_8 = arith.constant 0 : index
      %c0_9 = arith.constant 0 : index
      %10 = vector.load %arg5[%c0_8, %c0_9] : memref<1x128xf32, #tpu.memory_space<vmem>>, vector<1x128xf32>
      %11 = vector.shape_cast %10 : vector<1x128xf32> to vector<1x128xf32>
      %12 = vector.broadcast %11 : vector<1x128xf32> to vector<8x128xf32>
      %c0_10 = arith.constant 0 : index
      %c0_11 = arith.constant 0 : index
      %13 = vector.load %arg6[%c0_10, %c0_11] : memref<8x128xf32, #tpu.memory_space<vmem>>, vector<8x128xf32>
      tpu.vector_store %arg6[%c0_10, %c0_11], %12 {strides = array<i32>} : memref<8x128xf32, #tpu.memory_space<vmem>>, vector<8x128xf32>,
    } else {
    }
    %c0 = arith.constant 0 : index
    %c0_1 = arith.constant 0 : index
    %3 = vector.load %arg6[%c0, %c0_1] : memref<8x128xf32, #tpu.memory_space<vmem>>, vector<8x128xf32>
    %c0_2 = arith.constant 0 : index
    %c0_3 = arith.constant 0 : index
    %4 = vector.load %arg3[%c0_2, %c0_3] : memref<8x4xf32, #tpu.memory_space<vmem>>, vector<8x4xf32>
    %5 = arith.truncf %4 : vector<8x4xf32> to vector<8x4xbf16>
    %c0_4 = arith.constant 0 : index
    %c0_5 = arith.constant 0 : index
    %6 = vector.load %arg4[%c0_4, %c0_5] : memref<4x128xbf16, #tpu.memory_space<vmem>>, vector<4x128xbf16>
    %cst = arith.constant dense<0.000000e+00> : vector<8x128xf32>
    %7 = tpu.matmul %5, %6, %cst {dimension_numbers = #tpu.dot_dimension_numbers<[1], [0], [0], [1], [0, 0, 1, 1], [], []>} : vector<8x4xbf16>, vector<4x128xbf16>, vector<8x128xf32> -> vector<8x128xf32>
    %8 = arith.addf %3, %7 : vector<8x128xf32>
    %c0_6 = arith.constant 0 : index
    %c0_7 = arith.constant 0 : index
    %9 = vector.load %arg6[%c0_6, %c0_7] : memref<8x128xf32, #tpu.memory_space<vmem>>, vector<8x128xf32>
    tpu.vector_store %arg6[%c0_6, %c0_7], %8 {strides = array<i32>} : memref<8x128xf32, #tpu.memory_space<vmem>>, vector<8x128xf32>,
    return
  }
  func.func @transform_0(%arg0: i32, %arg1: i32, %arg2: i32) -> (i32, i32) {
    %c0_i32 = arith.constant 0 : i32
    return %arg0, %arg2 : i32, i32
  }
  func.func @transform_1(%arg0: i32, %arg1: i32, %arg2: i32) -> (i32, i32) {
    %c0_i32 = arith.constant 0 : i32
    return %arg2, %arg1 : i32, i32
  }
  func.func @transform_2(%arg0: i32, %arg1: i32, %arg2: i32) -> (i32, i32) {
    %c0_i32 = arith.constant 0 : i32
    %c0_i32_0 = arith.constant 0 : i32
    return %c0_i32, %arg1 : i32, i32
  }
  func.func @transform_3(%arg0: i32, %arg1: i32, %arg2: i32) -> (i32, i32) {
    %c0_i32 = arith.constant 0 : i32
    return %arg0, %arg1 : i32, i32
  }
}

</mosaic_0001>

<bundles_post_ra>
// kernel: fc_forward.1
= control target key start
LH: loop header
LB: loop body
LE: loop exit
PB: predicated region body
PF: predicated region fallthrough
CT: control target
= control target key end

     0   :  { %vm34_vm0 = vcmask 1041408   ;;  %vm30_vm1 = vcmask 31744   ;;  %s91_s1 = inlined_call_operand.vmem [shape: bf16[4,1], index: 1, kind: input, shape index: {}]   ;;  %s92_s0 = inlined_call_operand.vmem [shape: f32[8,4], index: 0, kind: input, shape index: {}]   ;;  %s93_s2 = inlined_call_operand.<no memory space> [shape: f32[1,1], index: 2, kind: input, shape index: {}]   ;;  %s94_s3 = inlined_call_operand.vmem [shape: f32[8,1], index: 3, kind: output, shape index: {}]  }
   0x1   :  { %v29_v0 = vld [vmem:[%s91_s1] sm:$0x3]  ;;  %v8_v2 = vstv %s93_s2 }
   0x2   :  { %v27_v1 = vld [vmem:[%s92_s0] sm:$0xff]  ;;  %v36_v3 = vsel %vm34_vm0, %v29_v0, 0  ;;  %9 = vst [vmem:[#allocation2] sm:$0x1] %v8_v2 }
   0x3   :  { %v28_v4 = vpack.c.bf16 %v27_v1, %v27_v1  ;;  %45 = vmatpush.bf16.msra.mxu0 %v36_v3 }
   0x6   :  { %57 = vmatmul.msk.bf16.vlgmr.msra.gmra.mxu0 %vm30_vm1, %v28_v4 }
   0x9   :  { %v58_v5 = vld [vmem:[#allocation2] ss:$0 sm:$0xff] }
  0x83   :  { %v47_v6 = vpop.f32.mrf.mxu0 }
  0x84   :  { %v51_v7 = vadd.f32 %v58_v5, %v47_v6 }
  0x86   :  { %52 = vst [vmem:[%s94_s3] sm:$0xff] %v51_v7 }
  0x8b   :  { %v49_v8 = vpop.f32.mrf.mxu0 }

</bundles_post_ra>
